<compile_context>
chip_gen: v7x
topology: tpu7x:2x2x1
jax: 0.10.0
libtpu: 0.0.40
codegen_flags: <defaults>
</compile_context>

<pallas_src>
import jax
import jax.numpy as jnp
from jax.experimental import pallas as pl
from jax.experimental.pallas import tpu as pltpu

HIDDEN = 768          # fixed by the module: nn.Linear(768, num_labels)
LANE = 128            # TPU lane width: label dim padded to this
SUBLANE = 8           # TPU sublane width: batch dim padded to a multiple of this
SMALL_BATCH_ROWS = 1024   # <= this: grid-less whole-array-VMEM call
TM = 512              # batch tile for the large-batch grid (safe on v5e/v6e/v7x)


def _round_up(x, m):
    return ((x + m - 1) // m) * m


def prepare_classifier_params(weight_t, bias):
    """One-time init: lane-pad + bf16-cast the Linear(768, num_labels) params.

    weight_t: (768, num_labels) = W.T ;  bias: (num_labels,)
    Returns (w_pad (768, lp) bf16, b_pad (1, lp) f32, num_labels).
    Padded columns are exact zeros (weight and bias), so padded logits are
    bias-free zeros and never contaminate the real columns.
    """
    num_labels = weight_t.shape[1]
    lp = _round_up(num_labels, LANE)
    w_pad = jnp.pad(weight_t, ((0, 0), (0, lp - num_labels))).astype(jnp.bfloat16)
    b_pad = jnp.pad(bias, (0, lp - num_labels)).reshape(1, lp).astype(jnp.float32)
    return w_pad, b_pad, num_labels


def bert_classifier_kernel(x_ref, w_ref, b_ref, o_ref):
    # Dropout(0.1) in eval mode == identity, so the hot path is matmul + bias.
    # Cast activations to bf16 in-kernel (VPU work hidden under the weight DMA).
    x = x_ref[...].astype(jnp.bfloat16)                       # (tm, 768) bf16
    acc = jnp.dot(x, w_ref[...], preferred_element_type=jnp.float32)  # MXU, f32 acc
    o_ref[...] = (acc + b_ref[...]).astype(o_ref.dtype)       # f32 epilogue


def bert_classifier_forward(text_input, emo_input, epoch, params):
    """text_input: (B, 768) f32; params = prepare_classifier_params(W.T, b)."""
    del emo_input, epoch  # unused in the reference forward
    w_pad, b_pad, num_labels = params
    B, H = text_input.shape
    assert H == HIDDEN
    lp = w_pad.shape[1]

    small = B <= SMALL_BATCH_ROWS
    # Row padding: sublane-align for the small path, tile-align for the tiled path.
    bp = _round_up(B, SUBLANE) if small else _round_up(B, TM)
    x = text_input
    if bp != B:
        x = jnp.pad(x, ((0, bp - B), (0, 0)))

    cost = pl.CostEstimate(
        flops=2 * bp * HIDDEN * lp,
        transcendentals=0,
        bytes_accessed=(bp * HIDDEN * 4) + (w_pad.size * 2) + (b_pad.size * 4)
        + (bp * lp * 4),
    )
    # Fold any remaining wrapper-side pad into the custom call's x operand.
    fusion = [True, False, False]

    if small:
        # Whole problem fits trivially in VMEM -> grid-less call, whole-array
        # VMEM blocks, no software-pipelining scaffolding.
        out_pad = pl.pallas_call(
            bert_classifier_kernel,
            out_shape=jax.ShapeDtypeStruct((bp, lp), jnp.float32),
            in_specs=[
                pl.BlockSpec(memory_space=pltpu.MemorySpace.VMEM),
                pl.BlockSpec(memory_space=pltpu.MemorySpace.VMEM),
                pl.BlockSpec(memory_space=pltpu.MemorySpace.VMEM),
            ],
            out_specs=pl.BlockSpec(memory_space=pltpu.MemorySpace.VMEM),
            compiler_params=pltpu.CompilerParams(allow_input_fusion=fusion),
            cost_estimate=cost,
        )(x, w_pad, b_pad)
    else:
        # Batch-tiled, megacore-parallel path: weight/bias stay resident, x/out
        # stream in TM-row tiles with double-buffered DMA/compute overlap.
        out_pad = pl.pallas_call(
            bert_classifier_kernel,
            out_shape=jax.ShapeDtypeStruct((bp, lp), jnp.float32),
            grid_spec=pltpu.PrefetchScalarGridSpec(
                num_scalar_prefetch=0,
                grid=(bp // TM,),
                in_specs=[
                    pl.BlockSpec((TM, HIDDEN), lambda i: (i, 0)),
                    pl.BlockSpec((HIDDEN, lp), lambda i: (0, 0)),
                    pl.BlockSpec((1, lp), lambda i: (0, 0)),
                ],
                out_specs=pl.BlockSpec((TM, lp), lambda i: (i, 0)),
            ),
            compiler_params=pltpu.CompilerParams(
                dimension_semantics=("parallel",),
                allow_input_fusion=fusion,
                vmem_limit_bytes=32 * 1024 * 1024,
            ),
            cost_estimate=cost,
        )(x, w_pad, b_pad)

    # Slice away the padded rows/columns outside the kernel.
    return out_pad[:B, :num_labels].astype(text_input.dtype)


if __name__ == "__main__":
    key = jax.random.PRNGKey(0)
    k_x, k_e, k_w, k_b, k_big = jax.random.split(key, 5)

    batch = 8
    num_labels = 4

    # Deterministic synthetic inputs / parameters.
    text_input = jax.random.normal(k_x, (batch, HIDDEN), dtype=jnp.float32)
    emo_input = jax.random.normal(k_e, (batch, 64), dtype=jnp.float32)  # unused by forward
    epoch = 0

    # nn.Linear(768, num_labels) parameters, stored as (768, num_labels) = W.T.
    bound = 1.0 / (HIDDEN ** 0.5)
    weight_t = jax.random.uniform(
        k_w, (HIDDEN, num_labels), minval=-bound, maxval=bound, dtype=jnp.float32
    )
    bias = jax.random.uniform(
        k_b, (num_labels,), minval=-bound, maxval=bound, dtype=jnp.float32
    )

    # One-time init: cache padded/cast parameters (hoisted per review).
    params = prepare_classifier_params(weight_t, bias)

    def ref_bf16(x):
        return jnp.dot(
            x.astype(jnp.bfloat16),
            weight_t.astype(jnp.bfloat16),
            preferred_element_type=jnp.float32,
        ) + bias[None, :]

    # --- small-batch (grid-less) path ------------------------------------------
    out = bert_classifier_forward(text_input, emo_input, epoch, params)
    out = jax.block_until_ready(out)

    ref_f32 = text_input @ weight_t + bias[None, :]
    assert out.shape == (batch, num_labels)
    assert jnp.allclose(out, ref_bf16(text_input), atol=1e-3, rtol=1e-3)
    assert jnp.allclose(out, ref_f32, atol=3e-2, rtol=3e-2)

    # --- large-batch (tiled, megacore-parallel) path ----------------------------
    big_batch = 1200  # > SMALL_BATCH_ROWS, not a multiple of TM or 8
    text_big = jax.random.normal(k_big, (big_batch, HIDDEN), dtype=jnp.float32)
    out_big = bert_classifier_forward(text_big, None, epoch, params)
    out_big = jax.block_until_ready(out_big)

    assert out_big.shape == (big_batch, num_labels)
    assert jnp.allclose(out_big, ref_bf16(text_big), atol=1e-3, rtol=1e-3)
    assert jnp.allclose(
        out_big, text_big @ weight_t + bias[None, :], atol=3e-2, rtol=3e-2
    )

    print("KERNEL_OK")
</pallas_src>

<mosaic_0001>
module attributes {stable_mosaic.version = 11 : i64} {
  func.func @bert_classifier_kernel(%arg0: memref<8x768xf32, #tpu.memory_space<vmem>>, %arg1: memref<768x128xbf16, #tpu.memory_space<vmem>>, %arg2: memref<1x128xf32, #tpu.memory_space<vmem>>, %arg3: memref<8x128xf32, #tpu.memory_space<vmem>>) attributes {dimension_semantics = [], scalar_prefetch = 0 : i64, scratch_operands = 0 : i64, tpu.core_type = #tpu.core_type<tc>} {
    %c0 = arith.constant 0 : index
    %c0_0 = arith.constant 0 : index
    %0 = vector.load %arg0[%c0, %c0_0] : memref<8x768xf32, #tpu.memory_space<vmem>>, vector<8x768xf32>
    %1 = arith.truncf %0 : vector<8x768xf32> to vector<8x768xbf16>
    %c0_1 = arith.constant 0 : index
    %c0_2 = arith.constant 0 : index
    %2 = vector.load %arg1[%c0_1, %c0_2] : memref<768x128xbf16, #tpu.memory_space<vmem>>, vector<768x128xbf16>
    %cst = arith.constant dense<0.000000e+00> : vector<8x128xf32>
    %3 = tpu.matmul %1, %2, %cst {dimension_numbers = #tpu.dot_dimension_numbers<[1], [0], [0], [1], [0, 0, 1, 1], [], []>} : vector<8x768xbf16>, vector<768x128xbf16>, vector<8x128xf32> -> vector<8x128xf32>
    %c0_3 = arith.constant 0 : index
    %c0_4 = arith.constant 0 : index
    %4 = vector.load %arg2[%c0_3, %c0_4] : memref<1x128xf32, #tpu.memory_space<vmem>>, vector<1x128xf32>
    %5 = vector.broadcast %4 : vector<1x128xf32> to vector<8x128xf32>
    %6 = arith.addf %3, %5 : vector<8x128xf32>
    %c0_5 = arith.constant 0 : index
    %c0_6 = arith.constant 0 : index
    %7 = vector.load %arg3[%c0_5, %c0_6] : memref<8x128xf32, #tpu.memory_space<vmem>>, vector<8x128xf32>
    tpu.vector_store %arg3[%c0_5, %c0_6], %6 {strides = array<i32>} : memref<8x128xf32, #tpu.memory_space<vmem>>, vector<8x128xf32>,
    return
  }
}

</mosaic_0001>

<bundles_post_ra>
// kernel: tpu_custom_call.1
= control target key start
LH: loop header
LB: loop body
LE: loop exit
PB: predicated region body
PF: predicated region fallthrough
CT: control target
= control target key end

     0   :  { %8 = vsyncpa [#allocation3], 0  ;;  %s893_s0 = inlined_call_operand.hbm [shape: f32[8,768], index: 0, kind: input, shape index: {}]   ;;  %s894_s1 = inlined_call_operand.hbm [shape: bf16[768,128], index: 1, kind: input, shape index: {}]   ;;  %s895_s2 = inlined_call_operand.vmem [shape: f32[1,128], index: 2, kind: input, shape index: {}]   ;;  %s896_s3 = inlined_call_operand.hbm [shape: f32[8,128], index: 3, kind: output, shape index: {}]  }
   0x1   :  { %9 = vsyncpa [#allocation6], 0 }
   0x2   :  { %10 = vsyncpa [#allocation4], 0  ;;  %s822_s12 = smov [#allocation2]   ;;  %s823_s14 = smov [#allocation5]  }
   0x3   :  { %s17_s13 = sshll.u32 %s822_s12, 4  ;;  %s26_s15 = sshll.u32 %s823_s14, 4  ;;  %s18_s13 = int_to_ptr.vmem [resolvable:$true] %s17_s13  ;;  %s847_s15 = int_to_ptr.vmem [resolvable:$true] %s26_s15 }
   0x4   :  { %s750_s18 = scalar_lea.hbm %s893_s0, 768 }
   0x5   :  { %p751_p0 = scmp.ne.s32.totalorder %s893_s0, %s750_s18  ;;  %p754_p1 = scmp.lt.u32.totalorder %s750_s18, %s893_s0 }
   0x7   :  { %p756_p2 = pnand %p754_p1, %p751_p0 }
   0x9   :  { %759 = shalt.err (!%p756_p2)
}
   0xa   :  { %s760_s23 = scalar_lea.vmem %s18_s13, 768  ;;  %p765_p4 = scmp.lt.s32.totalorder %s18_s13, %s18_s13 }
   0xb   :  { %p761_p3 = scmp.ne.s32.totalorder %s18_s13, %s760_s23  ;;  %p766_p5 = scmp.lt.s32.totalorder %s760_s23, %s760_s23 }
   0xd   :  { %p767_p6 = por %p766_p5, %p765_p4 }
   0xf   :  { %p768_p7 = pnand %p767_p6, %p761_p3 }
  0x11   :  { %771 = shalt.err (!%p768_p7)
}
  0x12   :  { %20 = dma.hbm_to_vmem [thread:$0]  %s893_s0, 768, %s18_s13, [#allocation3]  }
  0x13   :  { %s772_s28 = scalar_lea.hbm %s894_s1, 6144 }
  0x14   :  { %p773_p8 = scmp.ne.s32.totalorder %s894_s1, %s772_s28  ;;  %p776_p9 = scmp.lt.u32.totalorder %s772_s28, %s894_s1 }
  0x16   :  { %p778_p10 = pnand %p776_p9, %p773_p8 }
  0x18   :  { %781 = shalt.err (!%p778_p10)
}
  0x19   :  { %s782_s6 = scalar_lea.vmem %s847_s15, 6144  ;;  %p787_p12 = scmp.lt.s32.totalorder %s847_s15, %s847_s15 }
  0x1a   :  { %p783_p11 = scmp.ne.s32.totalorder %s847_s15, %s782_s6  ;;  %p788_p13 = scmp.lt.s32.totalorder %s782_s6, %s782_s6 }
  0x1c   :  { %p789_p0 = por %p788_p13, %p787_p12 }
  0x1e   :  { %p790_p1 = pnand %p789_p0, %p783_p11 }
  0x20   :  { %793 = shalt.err (!%p790_p1)
}
  0x21   :  { %s824_s0 = smov 64   ;;  %s825_s7 = smov 4  }
  0x22   :  { %32 = dma.hbm_to_vmem [thread:$0]  %s894_s1, 6144, %s847_s15, [#allocation6], %s824_s0, %s824_s0, %s825_s7  }
  0x23   :  { %816 = dma.done.wait [#allocation3], 768  }
  0x24   :  { %817 = vsyncadd [#allocation3], 4294966528 }
  0x25   :  { %818 = dma.done.wait [#allocation6], 6144  }
  0x26   :  { %819 = vsyncadd [#allocation6], 4294961152  ;;  %v702_v0 = vld [vmem:[#allocation5 + $0x40] sm:$0xff]   ;;  %v706_v4 = vld [vmem:[#allocation5 + $0x48] sm:$0xff]   ;;  %s826_s11 = smov [#allocation7]  }
  0x27   :  { %v703_v1 = vld [vmem:[#allocation5] sm:$0xff]   ;;  %631 = vmatprep.subr.bf16.mxu0 %v702_v0  ;;  %v707_v5 = vld [vmem:[#allocation5 + $0x8] sm:$0xff]   ;;  %v710_v8 = vld [vmem:[#allocation5 + $0x50] sm:$0xff]   ;;  %s572_s12 = sshll.u32 %s826_s11, 4  ;;  %s573_s12 = int_to_ptr.vmem [resolvable:$true] %s572_s12 }
  0x28   :  { %v704_v2 = vld [vmem:[#allocation5 + $0xc0] sm:$0xff]   ;;  %632 = vmatpush3.bf16.msra.mxu0 %v703_v1  ;;  %v708_v6 = vld [vmem:[#allocation5 + $0xc8] sm:$0xff]   ;;  %v711_v9 = vld [vmem:[#allocation5 + $0x10] sm:$0xff]   ;;  %p799_p3 = scmp.lt.s32.totalorder %s573_s12, %s573_s12 }
  0x29   :  { %v705_v3 = vld [vmem:[#allocation5 + $0x80] sm:$0xff]   ;;  %653 = vmatprep.subr.bf16.mxu1 %v704_v2  ;;  %633 = vmatprep.subr.bf16.mxu0 %v706_v4  ;;  %v709_v7 = vld [vmem:[#allocation5 + $0x88] sm:$0xff]   ;;  %v712_v10 = vld [vmem:[#allocation5 + $0xd0] sm:$0xff]  }
  0x2a   :  { %654 = vmatpush3.bf16.msra.mxu1 %v705_v3  ;;  %v713_v11 = vld [vmem:[#allocation5 + $0x90] sm:$0xff]   ;;  %v714_v12 = vld [vmem:[#allocation5 + $0x58] sm:$0xff]   ;;  %v718_v16 = vld [vmem:[#allocation5 + $0x60] sm:$0xff]  }
  0x2b   :  { %655 = vmatprep.subr.bf16.mxu1 %v708_v6  ;;  %v715_v13 = vld [vmem:[#allocation5 + $0x18] sm:$0xff]   ;;  %v719_v17 = vld [vmem:[#allocation5 + $0x20] sm:$0xff]   ;;  %v722_v20 = vld [vmem:[#allocation5 + $0x68] sm:$0xff]  }
  0x2c   :  { %634 = vmatpush3.bf16.msra.mxu0 %v707_v5  ;;  %v716_v14 = vld [vmem:[#allocation5 + $0xd8] sm:$0xff]   ;;  %v720_v18 = vld [vmem:[#allocation5 + $0xe0] sm:$0xff]   ;;  %v723_v21 = vld [vmem:[#allocation5 + $0x28] sm:$0xff]  }
  0x2d   :  { %635 = vmatprep.subr.bf16.mxu0 %v710_v8  ;;  %v717_v15 = vld [vmem:[#allocation5 + $0x98] sm:$0xff]   ;;  %v721_v19 = vld [vmem:[#allocation5 + $0xa0] sm:$0xff]   ;;  %v724_v22 = vld [vmem:[#allocation5 + $0xe8] sm:$0xff]  }
  0x2e   :  { %656 = vmatpush3.bf16.msra.mxu1 %v709_v7  ;;  %v725_v23 = vld [vmem:[#allocation5 + $0xa8] sm:$0xff]   ;;  %v726_v24 = vld [vmem:[#allocation5 + $0x70] sm:$0xff]   ;;  %v730_v28 = vld [vmem:[#allocation5 + $0x78] sm:$0xff]  }
  0x2f   :  { %657 = vmatprep.subr.bf16.mxu1 %v712_v10  ;;  %v727_v25 = vld [vmem:[#allocation5 + $0x30] sm:$0xff]   ;;  %v731_v29 = vld [vmem:[#allocation5 + $0x38] sm:$0xff]   ;;  %v734_v36 = vld [vmem:[#allocation5 + $0x140] sm:$0xff]  }
  0x30   :  { %636 = vmatpush3.bf16.msra.mxu0 %v711_v9  ;;  %v728_v26 = vld [vmem:[#allocation5 + $0xf0] sm:$0xff]   ;;  %v732_v30 = vld [vmem:[#allocation5 + $0xf8] sm:$0xff]   ;;  %v45_v37 = vld [vmem:[#allocation2 + $0x18] sm:$0xff] }
  0x31   :  { %637 = vmatprep.subr.bf16.mxu0 %v714_v12  ;;  %v729_v27 = vld [vmem:[#allocation5 + $0xb0] sm:$0xff]   ;;  %v43_v31 = vld [vmem:[#allocation2 + $0x8] sm:$0xff]  ;;  %v51_v38 = vpack.c.bf16 %v45_v37, %v45_v37  ;;  %v735_v39 = vld [vmem:[#allocation5 + $0x100] sm:$0xff]  }
  0x32   :  { %658 = vmatpush3.bf16.msra.mxu1 %v713_v11  ;;  %v49_v32 = vpack.c.bf16 %v43_v31, %v43_v31  ;;  %v733_v33 = vld [vmem:[#allocation5 + $0xb8] sm:$0xff]   ;;  %v42_v34 = vld [vmem:[#allocation2] sm:$0xff]  ;;  %v44_v40 = vld [vmem:[#allocation2 + $0x10] sm:$0xff] }
  0x33   :  { %659 = vmatprep.subr.bf16.mxu1 %v716_v14  ;;  %v48_v35 = vpack.c.bf16 %v42_v34, %v42_v34  ;;  %517 = vmatprep.mubr.bf16.mxu1 %v51_v38  ;;  %v50_v41 = vpack.c.bf16 %v44_v40, %v44_v40  ;;  %v736_v42 = vld [vmem:[#allocation5 + $0x148] sm:$0xff]   ;;  %v738_v44 = vld [vmem:[#allocation5 + $0x150] sm:$0xff]   ;;  %v740_v46 = vld [vmem:[#allocation5 + $0x158] sm:$0xff]  }
  0x34   :  { %638 = vmatpush3.bf16.msra.mxu0 %v715_v13  ;;  %477 = vmatprep.mubr.bf16.mxu0 %v49_v32  ;;  %v737_v43 = vld [vmem:[#allocation5 + $0x108] sm:$0xff]   ;;  %v739_v45 = vld [vmem:[#allocation5 + $0x110] sm:$0xff]   ;;  %v741_v47 = vld [vmem:[#allocation5 + $0x118] sm:$0xff]  }
  0x35   :  { %639 = vmatprep.subr.bf16.mxu0 %v718_v16  ;;  %v742_v48 = vld [vmem:[#allocation5 + $0x160] sm:$0xff]   ;;  %v744_v50 = vld [vmem:[#allocation5 + $0x168] sm:$0xff]   ;;  %v47_v51 = vld [vmem:[#allocation2 + $0x28] sm:$0xff] }
  0x36   :  { %660 = vmatpush3.bf16.msra.mxu1 %v717_v15  ;;  %v743_v49 = vld [vmem:[#allocation5 + $0x120] sm:$0xff]   ;;  %v53_v52 = vpack.c.bf16 %v47_v51, %v47_v51  ;;  %v745_v53 = vld [vmem:[#allocation5 + $0x128] sm:$0xff]   ;;  %v746_v54 = vld [vmem:[#allocation5 + $0x170] sm:$0xff]  }
  0x37   :  { %661 = vmatprep.subr.bf16.mxu1 %v720_v18  ;;  %v747_v55 = vld [vmem:[#allocation5 + $0x130] sm:$0xff]   ;;  %v748_v56 = vld [vmem:[#allocation5 + $0x178] sm:$0xff]  }
  0x38   :  { %640 = vmatpush3.bf16.msra.mxu0 %v719_v17  ;;  %v749_v57 = vld [vmem:[#allocation5 + $0x138] sm:$0xff]   ;;  %v46_v58 = vld [vmem:[#allocation2 + $0x20] sm:$0xff] }
  0x39   :  { %641 = vmatprep.subr.bf16.mxu0 %v722_v20  ;;  %v52_v59 = vpack.c.bf16 %v46_v58, %v46_v58  ;;  %v582_v61 = vld [vmem:[%s895_s2] ss:$0 sm:$0xff]  ;;  %s794_s2 = scalar_lea.vmem %s573_s12, 128 }
  0x3a   :  { %662 = vmatpush3.bf16.msra.mxu1 %v721_v19  ;;  %p795_p2 = scmp.ne.s32.totalorder %s573_s12, %s794_s2  ;;  %p800_p4 = scmp.lt.s32.totalorder %s794_s2, %s794_s2 }
  0x3b   :  { %663 = vmatprep.subr.bf16.mxu1 %v724_v22 }
  0x3c   :  { %642 = vmatpush3.bf16.msra.mxu0 %v723_v21  ;;  %p801_p5 = por %p800_p4, %p799_p3 }
  0x3d   :  { %643 = vmatprep.subr.bf16.mxu0 %v726_v24 }
  0x3e   :  { %664 = vmatpush3.bf16.msra.mxu1 %v725_v23  ;;  %p802_p6 = pnand %p801_p5, %p795_p2 }
  0x3f   :  { %665 = vmatprep.subr.bf16.mxu1 %v728_v26 }
  0x40   :  { %644 = vmatpush3.bf16.msra.mxu0 %v727_v25 }
  0x41   :  { %645 = vmatprep.subr.bf16.mxu0 %v730_v28 }
  0x42   :  { %666 = vmatpush3.bf16.msra.mxu1 %v729_v27 }
  0x43   :  { %667 = vmatprep.subr.bf16.mxu1 %v732_v30 }
  0x44   :  { %646 = vmatpush3.bf16.msra.mxu0 %v731_v29 }
  0x45   :  { %675 = vmatprep.subr.bf16.mxu0 %v734_v36 }
  0x46   :  { %668 = vmatpush3.bf16.msra.mxu1 %v733_v33 }
  0x47   :  { %478 = vmatmul.mubr.bf16.vlgmr.msra.gmra.mrb[0].mxu0 %v48_v35 }
  0x48   :  { %676 = vmatpush3.bf16.msra.mxu0 %v735_v39  ;;  %557 = vmatprep.mubr.bf16.mxu0 %v53_v52 }
  0x49   :  { %518 = vmatmul.mubr.bf16.vlgmr.msra.gmra.mrb[0].mxu1 %v50_v41  ;;  %677 = vmatprep.subr.bf16.mxu0 %v736_v42 }
  0x4c   :  { %678 = vmatpush3.bf16.msra.mxu0 %v737_v43 }
  0x4d   :  { %679 = vmatprep.subr.bf16.mxu0 %v738_v44 }
  0x50   :  { %680 = vmatpush3.bf16.msra.mxu0 %v739_v45 }
  0x51   :  { %681 = vmatprep.subr.bf16.mxu0 %v740_v46 }
  0x54   :  { %682 = vmatpush3.bf16.msra.mxu0 %v741_v47 }
  0x55   :  { %683 = vmatprep.subr.bf16.mxu0 %v742_v48 }
  0x58   :  { %684 = vmatpush3.bf16.msra.mxu0 %v743_v49 }
  0x59   :  { %685 = vmatprep.subr.bf16.mxu0 %v744_v50 }
  0x5c   :  { %686 = vmatpush3.bf16.msra.mxu0 %v745_v53 }
  0x5d   :  { %687 = vmatprep.subr.bf16.mxu0 %v746_v54 }
  0x60   :  { %688 = vmatpush3.bf16.msra.mxu0 %v747_v55 }
  0x61   :  { %689 = vmatprep.subr.bf16.mxu0 %v748_v56 }
  0x64   :  { %690 = vmatpush3.bf16.msra.mxu0 %v749_v57 }
  0x67   :  { %558 = vmatmul.mubr.bf16.vlgmr.msra.gmra.mrb[4].mxu0 %v52_v59 }
 0x11a   :  { %v647_v60 = vpop.f32.mrb[0].mxu0 }
 0x11b   :  { %v648_v62 = vpop.f32.mrb[1].mxu0 }
 0x11c   :  { %v649_v63 = vadd.f32 %v648_v62, %v647_v60  ;;  %v650_v0 = vpop.f32.mrb[2].mxu0  ;;  %v669_v1 = vpop.f32.mrb[0].mxu1 }
 0x11d   :  { %v651_v2 = vpop.f32.mrb[3].mxu0  ;;  %v670_v4 = vpop.f32.mrb[1].mxu1 }
 0x11e   :  { %v480_v3 = vadd.f32 %v649_v63, %v582_v61  ;;  %v671_v5 = vadd.f32 %v670_v4, %v669_v1  ;;  %v672_v6 = vpop.f32.mrb[2].mxu1 }
 0x11f   :  { %v673_v7 = vpop.f32.mrb[3].mxu1 }
 0x120   :  { %v520_v8 = vadd.f32 %v671_v5, %v480_v3 }
 0x13a   :  { %v691_v9 = vpop.f32.mrb[4].mxu0 }
 0x13b   :  { %v692_v10 = vpop.f32.mrb[5].mxu0 }
 0x13c   :  { %v693_v11 = vadd.f32 %v692_v10, %v691_v9  ;;  %v694_v12 = vpop.f32.mrb[6].mxu0 }
 0x13d   :  { %v695_v13 = vpop.f32.mrb[7].mxu0 }
 0x13e   :  { %v560_v14 = vadd.f32 %v693_v11, %v520_v8 }
 0x140   :  { %565 = vst [vmem:[#allocation7] sm:$0xff] %v560_v14 }
 0x141   :  { %805 = shalt.err (!%p802_p6)
}
 0x142   :  { %s806_s15 = scalar_lea.hbm %s896_s3, 128 }
 0x143   :  { %p807_p7 = scmp.ne.s32.totalorder %s896_s3, %s806_s15  ;;  %p810_p8 = scmp.lt.u32.totalorder %s806_s15, %s896_s3 }
 0x145   :  { %p812_p9 = pnand %p810_p8, %p807_p7 }
 0x147   :  { %815 = shalt.err (!%p812_p9)
}
 0x148   :  { %575 = dma.vmem_to_hbm [thread:$0]  %s573_s12, 128, %s896_s3, [#allocation4]  }
 0x149   :  { %820 = dma.done.wait [#allocation4], 128  }
 0x14a   :  { %821 = vsyncadd [#allocation4], 4294967168 }
 0x14b   :  { %579 = vsyncpa [#allocation3], 1 }
 0x14c   :  { %580 = vsyncpa [#allocation6], 1 }
 0x14d   :  { %581 = vsyncpa [#allocation4], 1 }

</bundles_post_ra>
